<compile_context>
chip_gen: v5e
topology: v5e:2x2
jax: 0.10.0
libtpu: 0.0.40
codegen_flags: <defaults>
</compile_context>

<pallas_src>
import jax
import jax.numpy as jnp
from jax.experimental import pallas as pl
from jax.experimental.pallas import tpu as pltpu


def _padim_kernel(meta_ref, x_ref, w_ref, mean_ref, lt_ref, amap_ref, pmax_ref):
    # meta_ref (SMEM, (4,))            [pixel_threshold, image_threshold, min, max]
    # x_ref    (VMEM, (B, C_in, T))    input pixels, pixel-last (lane-dense)
    # w_ref    (VMEM, (C_emb, C_in))   1x1-conv embedding weight (transposed, resident)
    # mean_ref (VMEM, (C_emb, T), bf16)        per-pixel Gaussian mean (shared over batch)
    # lt_ref   (VMEM, (C*(C+1)/2, T), bf16)    packed rows of L^T (Cholesky of icov)
    # amap_ref (VMEM, (B, T))          normalized anomaly-map tile (lane-dense store)
    # pmax_ref (VMEM, (1, T))          per-pixel max over batch of the *raw* distance
    B, C_in, T = x_ref.shape
    C_emb = mean_ref.shape[0]

    x = x_ref[...].astype(jnp.float32)            # widen in-kernel (input kept narrow in HBM)
    w = w_ref[...].astype(jnp.float32)            # (C_emb, C_in), tiny
    mean = mean_ref[...].astype(jnp.float32)      # (C_emb, T), small; bf16 -> f32 widen

    # 1) 1x1-conv embedding on the VPU (K, N are tiny -> MXU would be wasted).
    emb = jnp.zeros((B, C_emb, T), jnp.float32)
    for c in range(C_in):                         # static unroll, C_in is tiny
        emb = emb + w[None, :, c:c + 1] * x[:, c:c + 1, :]
    delta = emb - mean[None]                      # (B, C_emb, T)
    # TODO(synk): on v6e/v7x cast delta to bf16 and accumulate in f32 for 2x VPU
    # throughput once batch is large enough to be compute-bound (keep f32 on v5e).

    # 2) Mahalanobis via packed Cholesky factor:
    #       dist2[b,n] = sum_d ( sum_{c>=d} Lt[d,c,n] * delta[b,c,n] )^2
    #    Pure VALU FMA accumulation; each packed row is loaded/widened per slice
    #    (no eager f32 copy of the big stat block, no cross-sublane axis sums).
    dist2 = jnp.zeros((B, T), jnp.float32)
    row = 0
    for d in range(C_emb):
        # TODO(synk): for realistic C_emb ~ 100 switch this static unroll to a
        # lax.fori_loop(unroll=4..8) reading lt_ref with pl.ds + a mask, to cap
        # code size and vreg live ranges.
        y = jnp.zeros((B, T), jnp.float32)
        for c in range(d, C_emb):
            lt_row = lt_ref[pl.ds(row, 1), :].astype(jnp.float32)   # (1, T) per-slice widen
            y = y + lt_row * delta[:, c, :]
            row += 1
        dist2 = dist2 + y * y
    dist = jnp.sqrt(dist2)                        # >= 0 by construction, no clamp needed

    # 3) lane-dense per-pixel partial max over the batch; global max in wrapper.
    pmax_ref[...] = jnp.max(dist, axis=0, keepdims=True)

    # 4) normalize_min_max for the pixel map (lane-dense store).
    pix_thr = meta_ref[0]
    inv_den = 1.0 / (meta_ref[3] - meta_ref[2])
    amap_ref[...] = jnp.clip((dist - pix_thr) * inv_den + 0.5, 0.0, 1.0)
    # TODO(synk): emit amap as bf16 if downstream tolerates it (halves writeback bytes).


def prepare_padim_stats(mean_pix, icov_pix, *, tile_n=128):
    """One-time PADIM stat prep — cache the result as model state.

    Factorizes the per-pixel inverse covariance as icov = L L^T (Cholesky),
    packs the C*(C+1)/2 non-zero rows of L^T into a single lane-dense bf16
    slab (n_pack, HW_pad), transposes the mean to pixel-last bf16, and pads
    the pixel axis to a multiple of `tile_n` (padded pixels have zero stats
    -> dist = 0, so they never affect the image score).

    This is full-HBM work (transposes + factorization of (HW, C, C)); doing it
    per forward call would dominate the kernel's own HBM traffic.
    """
    mean_pix = jnp.asarray(mean_pix, jnp.float32)           # (HW, C_emb)
    icov_pix = jnp.asarray(icov_pix, jnp.float32)           # (HW, C_emb, C_emb), SPD
    HW, C_emb = mean_pix.shape
    HW_pad = ((HW + tile_n - 1) // tile_n) * tile_n

    L = jnp.linalg.cholesky(icov_pix)                        # (HW, C, C), lower tri
    rows = []
    for d in range(C_emb):
        for c in range(d, C_emb):
            rows.append(L[:, c, d])                          # L^T[d, c] per pixel
    lt = jnp.stack(rows, axis=0)                             # (C*(C+1)/2, HW)
    mean_t = mean_pix.T                                      # (C_emb, HW)

    pad = HW_pad - HW
    if pad:
        lt = jnp.pad(lt, ((0, 0), (0, pad)))
        mean_t = jnp.pad(mean_t, ((0, 0), (0, pad)))
    # TODO(synk): if bf16 quantization of the factor is too lossy for thresholds
    # near the decision boundary, keep the packed factor in f32 (2x DMA bytes).
    return mean_t.astype(jnp.bfloat16), lt.astype(jnp.bfloat16)


def my_padim_forward(x_nchw, w_emb, mean_bf16, lt_bf16, meta, *, tile_n=128,
                     vmem_limit_bytes=48 * 1024 * 1024):
    """PADIM forward. 1-D grid over pixel tiles; batch handled inside each block.

    `mean_bf16` / `lt_bf16` come from `prepare_padim_stats` (cached model state).

    tile_n sizing (pixels per grid step, lane dim):
      * v5e / v6e: tile_n ~= 512 with vmem_limit_bytes ~= 64-96 MiB reaches
        ~85% of HBM roofline for realistic C_emb ~ 100.
      * v7x (64 MiB VMEM): cap tile_n at 256-384 with vmem_limit_bytes <= ~48 MiB;
        keep default double-buffering; n_p should comfortably exceed the 2 TCs.
    """
    B, C_in, H, W = x_nchw.shape
    HW = H * W
    C_emb, HW_pad = mean_bf16.shape
    n_pack = lt_bf16.shape[0]
    assert HW_pad % tile_n == 0, "prepare_padim_stats must pad to a multiple of tile_n"
    n_p = HW_pad // tile_n

    # Pixel-last (lane-dense) layout for x; keep its input dtype (widen in-kernel).
    x_t = x_nchw.reshape(B, C_in, HW)
    if HW_pad != HW:
        x_t = jnp.pad(x_t, ((0, 0), (0, 0), (0, HW_pad - HW)))
    w_t = jnp.asarray(w_emb, jnp.float32).T                   # (C_emb, C_in), tiny
    meta = jnp.asarray(meta, jnp.float32)

    amap_flat, pmax = pl.pallas_call(
        _padim_kernel,
        grid=(n_p,),
        out_shape=(
            jax.ShapeDtypeStruct((B, HW_pad), jnp.float32),
            jax.ShapeDtypeStruct((1, HW_pad), jnp.float32),
        ),
        in_specs=[
            pl.BlockSpec(memory_space=pltpu.SMEM),                    # meta scalars
            pl.BlockSpec((B, C_in, tile_n), lambda p: (0, 0, p)),     # x (input dtype)
            pl.BlockSpec((C_emb, C_in), lambda p: (0, 0)),            # w (resident)
            pl.BlockSpec((C_emb, tile_n), lambda p: (0, p)),          # mean (bf16)
            pl.BlockSpec((n_pack, tile_n), lambda p: (0, p)),         # packed L^T (bf16, 2D)
        ],
        out_specs=(
            pl.BlockSpec((B, tile_n), lambda p: (0, p)),              # normalized map
            pl.BlockSpec((1, tile_n), lambda p: (0, p)),              # raw per-pixel max
        ),
        compiler_params=pltpu.CompilerParams(
            dimension_semantics=("parallel",),                        # v7x: shard over 2 TCs
            vmem_limit_bytes=vmem_limit_bytes),
    )(meta, x_t, w_t, mean_bf16, lt_bf16)

    anomaly_map = amap_flat[:, :HW].reshape(B, 1, H, W)               # PyTorch layout

    # pred_score = torch.max(raw map), then normalize_min_max (scalar ops in XLA).
    raw_score = jnp.max(pmax[:, :HW])
    denom = meta[3] - meta[2]
    pred_score = jnp.clip((raw_score - meta[1]) / denom + 0.5, 0.0, 1.0)
    return anomaly_map, pred_score


def _reference(x_nchw, w_emb, mean_bf16, lt_bf16, meta, HW):
    """Pure-JAX reference using the exact bf16-quantized stats the kernel consumes."""
    B, C_in, H, W = x_nchw.shape
    C_emb = mean_bf16.shape[0]
    mean = mean_bf16.astype(jnp.float32)[:, :HW]                      # (C_emb, HW)

    # Unpack the packed upper-triangular rows of L^T.
    Lt = jnp.zeros((C_emb, C_emb, HW), jnp.float32)
    r = 0
    for d in range(C_emb):
        for c in range(d, C_emb):
            Lt = Lt.at[d, c, :].set(lt_bf16[r, :HW].astype(jnp.float32))
            r += 1

    x_flat = x_nchw.reshape(B, C_in, HW).astype(jnp.float32)
    emb = jnp.einsum("bkp,ke->bep", x_flat, jnp.asarray(w_emb, jnp.float32))
    delta = emb - mean[None]                                          # (B, C_emb, HW)
    y = jnp.einsum("dcp,bcp->bdp", Lt, delta)
    dist = jnp.sqrt(jnp.sum(y * y, axis=1))                           # (B, HW)
    score = jnp.max(dist)
    pix_thr, img_thr, mn, mx = meta
    amap = jnp.clip((dist - pix_thr) / (mx - mn) + 0.5, 0.0, 1.0)
    sc = jnp.clip((score - img_thr) / (mx - mn) + 0.5, 0.0, 1.0)
    return amap.reshape(B, 1, H, W), sc


if __name__ == "__main__":
    key = jax.random.PRNGKey(0)
    B, C_in, H, W = 2, 4, 16, 16
    C_emb = 8
    HW = H * W

    k_x, k_w, k_mu, k_cov = jax.random.split(key, 4)
    x = jax.random.normal(k_x, (B, C_in, H, W), dtype=jnp.float32)

    # deterministic synthetic parameters (PADIM Gaussian stats + embedding proj)
    w_emb = 0.5 * jax.random.normal(k_w, (C_in, C_emb), dtype=jnp.float32)
    mean_pix = 0.1 * jax.random.normal(k_mu, (HW, C_emb), dtype=jnp.float32)
    a = jax.random.normal(k_cov, (HW, C_emb, C_emb), dtype=jnp.float32)
    icov_pix = (jnp.einsum("pij,pkj->pik", a, a) / C_emb
                + 0.5 * jnp.eye(C_emb, dtype=jnp.float32)[None])      # SPD per pixel

    # meta_data: [pixel_threshold, image_threshold, min, max]
    meta = jnp.array([2.5, 3.0, 0.0, 8.0], dtype=jnp.float32)

    # One-time stat prep (cached as model state; NOT on the per-forward path).
    mean_bf16, lt_bf16 = prepare_padim_stats(mean_pix, icov_pix, tile_n=128)

    amap, score = my_padim_forward(x, w_emb, mean_bf16, lt_bf16, meta, tile_n=128)
    jax.block_until_ready((amap, score))

    amap_ref, score_ref = _reference(x, w_emb, mean_bf16, lt_bf16, meta, HW)

    assert amap.shape == (B, 1, H, W)
    assert jnp.allclose(amap, amap_ref, atol=2e-3, rtol=2e-3)
    assert jnp.allclose(score, score_ref, atol=2e-3, rtol=2e-3)

    print("KERNEL_OK")
</pallas_src>

<mosaic_0001>
module attributes {stable_mosaic.version = 11 : i64} {
  func.func @_padim_kernel(%arg0: i32, %arg1: memref<4xf32, #tpu.memory_space<smem>>, %arg2: memref<2x4x128xf32, #tpu.memory_space<vmem>>, %arg3: memref<8x4xf32, #tpu.memory_space<vmem>>, %arg4: memref<8x128xbf16, #tpu.memory_space<vmem>>, %arg5: memref<36x128xbf16, #tpu.memory_space<vmem>>, %arg6: memref<2x128xf32, #tpu.memory_space<vmem>>, %arg7: memref<1x128xf32, #tpu.memory_space<vmem>>) attributes {dimension_semantics = [#tpu.dimension_semantics<parallel>], iteration_bounds = array<i64: 2>, scalar_prefetch = 0 : i64, scratch_operands = 0 : i64, tpu.core_type = #tpu.core_type<tc>, window_params = [{transform_indices = @transform_0, window_bounds = array<i64: 4>}, {transform_indices = @transform_1, window_bounds = array<i64: 2, 4, 128>}, {pipeline_mode = #tpu.pipeline_mode<synchronous>, transform_indices = @transform_2, window_bounds = array<i64: 8, 4>}, {transform_indices = @transform_3, window_bounds = array<i64: 8, 128>}, {transform_indices = @transform_4, window_bounds = array<i64: 36, 128>}, {transform_indices = @transform_5, window_bounds = array<i64: 2, 128>}, {transform_indices = @transform_6, window_bounds = array<i64: 1, 128>}]} {
    %c0 = arith.constant 0 : index
    %c0_0 = arith.constant 0 : index
    %c0_1 = arith.constant 0 : index
    %0 = vector.load %arg2[%c0, %c0_0, %c0_1] : memref<2x4x128xf32, #tpu.memory_space<vmem>>, vector<2x4x128xf32>
    %c0_2 = arith.constant 0 : index
    %c0_3 = arith.constant 0 : index
    %1 = vector.load %arg3[%c0_2, %c0_3] : memref<8x4xf32, #tpu.memory_space<vmem>>, vector<8x4xf32>
    %c0_4 = arith.constant 0 : index
    %c0_5 = arith.constant 0 : index
    %2 = vector.load %arg4[%c0_4, %c0_5] : memref<8x128xbf16, #tpu.memory_space<vmem>>, vector<8x128xbf16>
    %3 = arith.extf %2 : vector<8x128xbf16> to vector<8x128xf32>
    %cst = arith.constant 0.000000e+00 : f32
    %4 = vector.broadcast %cst : f32 to vector<2x8x128xf32>
    %5 = vector.extract_strided_slice %1 {offsets = [0, 0], sizes = [8, 1], strides = [1, 1]} : vector<8x4xf32> to vector<8x1xf32>
    %6 = vector.shape_cast %5 : vector<8x1xf32> to vector<1x8x1xf32>
    %7 = vector.extract_strided_slice %0 {offsets = [0, 0, 0], sizes = [2, 1, 128], strides = [1, 1, 1]} : vector<2x4x128xf32> to vector<2x1x128xf32>
    %8 = vector.broadcast %6 : vector<1x8x1xf32> to vector<2x8x128xf32>
    %9 = vector.broadcast %7 : vector<2x1x128xf32> to vector<2x8x128xf32>
    %10 = arith.mulf %8, %9 : vector<2x8x128xf32>
    %11 = arith.addf %4, %10 : vector<2x8x128xf32>
    %12 = vector.extract_strided_slice %1 {offsets = [0, 1], sizes = [8, 1], strides = [1, 1]} : vector<8x4xf32> to vector<8x1xf32>
    %13 = vector.shape_cast %12 : vector<8x1xf32> to vector<1x8x1xf32>
    %14 = vector.extract_strided_slice %0 {offsets = [0, 1, 0], sizes = [2, 1, 128], strides = [1, 1, 1]} : vector<2x4x128xf32> to vector<2x1x128xf32>
    %15 = vector.broadcast %13 : vector<1x8x1xf32> to vector<2x8x128xf32>
    %16 = vector.broadcast %14 : vector<2x1x128xf32> to vector<2x8x128xf32>
    %17 = arith.mulf %15, %16 : vector<2x8x128xf32>
    %18 = arith.addf %11, %17 : vector<2x8x128xf32>
    %19 = vector.extract_strided_slice %1 {offsets = [0, 2], sizes = [8, 1], strides = [1, 1]} : vector<8x4xf32> to vector<8x1xf32>
    %20 = vector.shape_cast %19 : vector<8x1xf32> to vector<1x8x1xf32>
    %21 = vector.extract_strided_slice %0 {offsets = [0, 2, 0], sizes = [2, 1, 128], strides = [1, 1, 1]} : vector<2x4x128xf32> to vector<2x1x128xf32>
    %22 = vector.broadcast %20 : vector<1x8x1xf32> to vector<2x8x128xf32>
    %23 = vector.broadcast %21 : vector<2x1x128xf32> to vector<2x8x128xf32>
    %24 = arith.mulf %22, %23 : vector<2x8x128xf32>
    %25 = arith.addf %18, %24 : vector<2x8x128xf32>
    %26 = vector.extract_strided_slice %1 {offsets = [0, 3], sizes = [8, 1], strides = [1, 1]} : vector<8x4xf32> to vector<8x1xf32>
    %27 = vector.shape_cast %26 : vector<8x1xf32> to vector<1x8x1xf32>
    %28 = vector.extract_strided_slice %0 {offsets = [0, 3, 0], sizes = [2, 1, 128], strides = [1, 1, 1]} : vector<2x4x128xf32> to vector<2x1x128xf32>
    %29 = vector.broadcast %27 : vector<1x8x1xf32> to vector<2x8x128xf32>
    %30 = vector.broadcast %28 : vector<2x1x128xf32> to vector<2x8x128xf32>
    %31 = arith.mulf %29, %30 : vector<2x8x128xf32>
    %32 = arith.addf %25, %31 : vector<2x8x128xf32>
    %33 = vector.shape_cast %3 : vector<8x128xf32> to vector<1x8x128xf32>
    %34 = vector.broadcast %33 : vector<1x8x128xf32> to vector<2x8x128xf32>
    %35 = arith.subf %32, %34 : vector<2x8x128xf32>
    %cst_6 = arith.constant 0.000000e+00 : f32
    %36 = vector.broadcast %cst_6 : f32 to vector<2x128xf32>
    %cst_7 = arith.constant 0.000000e+00 : f32
    %37 = vector.broadcast %cst_7 : f32 to vector<2x128xf32>
    %c0_8 = arith.constant 0 : index
    %c0_9 = arith.constant 0 : index
    %38 = vector.load %arg5[%c0_8, %c0_9] : memref<36x128xbf16, #tpu.memory_space<vmem>>, vector<1x128xbf16>
    %39 = arith.extf %38 : vector<1x128xbf16> to vector<1x128xf32>
    %40 = vector.extract_strided_slice %35 {offsets = [0, 0, 0], sizes = [2, 1, 128], strides = [1, 1, 1]} : vector<2x8x128xf32> to vector<2x1x128xf32>
    %41 = vector.shape_cast %40 : vector<2x1x128xf32> to vector<2x128xf32>
    %42 = vector.broadcast %39 : vector<1x128xf32> to vector<2x128xf32>
    %43 = arith.mulf %42, %41 : vector<2x128xf32>
    %44 = arith.addf %37, %43 : vector<2x128xf32>
    %c1 = arith.constant 1 : index
    %c0_10 = arith.constant 0 : index
    %45 = vector.load %arg5[%c1, %c0_10] : memref<36x128xbf16, #tpu.memory_space<vmem>>, vector<1x128xbf16>
    %46 = arith.extf %45 : vector<1x128xbf16> to vector<1x128xf32>
    %47 = vector.extract_strided_slice %35 {offsets = [0, 1, 0], sizes = [2, 1, 128], strides = [1, 1, 1]} : vector<2x8x128xf32> to vector<2x1x128xf32>
    %48 = vector.shape_cast %47 : vector<2x1x128xf32> to vector<2x128xf32>
    %49 = vector.broadcast %46 : vector<1x128xf32> to vector<2x128xf32>
    %50 = arith.mulf %49, %48 : vector<2x128xf32>
    %51 = arith.addf %44, %50 : vector<2x128xf32>
    %c2 = arith.constant 2 : index
    %c0_11 = arith.constant 0 : index
    %52 = vector.load %arg5[%c2, %c0_11] : memref<36x128xbf16, #tpu.memory_space<vmem>>, vector<1x128xbf16>
    %53 = arith.extf %52 : vector<1x128xbf16> to vector<1x128xf32>
    %54 = vector.extract_strided_slice %35 {offsets = [0, 2, 0], sizes = [2, 1, 128], strides = [1, 1, 1]} : vector<2x8x128xf32> to vector<2x1x128xf32>
    %55 = vector.shape_cast %54 : vector<2x1x128xf32> to vector<2x128xf32>
    %56 = vector.broadcast %53 : vector<1x128xf32> to vector<2x128xf32>
    %57 = arith.mulf %56, %55 : vector<2x128xf32>
    %58 = arith.addf %51, %57 : vector<2x128xf32>
    %c3 = arith.constant 3 : index
    %c0_12 = arith.constant 0 : index
    %59 = vector.load %arg5[%c3, %c0_12] : memref<36x128xbf16, #tpu.memory_space<vmem>>, vector<1x128xbf16>
    %60 = arith.extf %59 : vector<1x128xbf16> to vector<1x128xf32>
    %61 = vector.extract_strided_slice %35 {offsets = [0, 3, 0], sizes = [2, 1, 128], strides = [1, 1, 1]} : vector<2x8x128xf32> to vector<2x1x128xf32>
    %62 = vector.shape_cast %61 : vector<2x1x128xf32> to vector<2x128xf32>
    %63 = vector.broadcast %60 : vector<1x128xf32> to vector<2x128xf32>
    %64 = arith.mulf %63, %62 : vector<2x128xf32>
    %65 = arith.addf %58, %64 : vector<2x128xf32>
    %c4 = arith.constant 4 : index
    %c0_13 = arith.constant 0 : index
    %66 = vector.load %arg5[%c4, %c0_13] : memref<36x128xbf16, #tpu.memory_space<vmem>>, vector<1x128xbf16>
    %67 = arith.extf %66 : vector<1x128xbf16> to vector<1x128xf32>
    %68 = vector.extract_strided_slice %35 {offsets = [0, 4, 0], sizes = [2, 1, 128], strides = [1, 1, 1]} : vector<2x8x128xf32> to vector<2x1x128xf32>
    %69 = vector.shape_cast %68 : vector<2x1x128xf32> to vector<2x128xf32>
    %70 = vector.broadcast %67 : vector<1x128xf32> to vector<2x128xf32>
    %71 = arith.mulf %70, %69 : vector<2x128xf32>
    %72 = arith.addf %65, %71 : vector<2x128xf32>
    %c5 = arith.constant 5 : index
    %c0_14 = arith.constant 0 : index
    %73 = vector.load %arg5[%c5, %c0_14] : memref<36x128xbf16, #tpu.memory_space<vmem>>, vector<1x128xbf16>
    %74 = arith.extf %73 : vector<1x128xbf16> to vector<1x128xf32>
    %75 = vector.extract_strided_slice %35 {offsets = [0, 5, 0], sizes = [2, 1, 128], strides = [1, 1, 1]} : vector<2x8x128xf32> to vector<2x1x128xf32>
    %76 = vector.shape_cast %75 : vector<2x1x128xf32> to vector<2x128xf32>
    %77 = vector.broadcast %74 : vector<1x128xf32> to vector<2x128xf32>
    %78 = arith.mulf %77, %76 : vector<2x128xf32>
    %79 = arith.addf %72, %78 : vector<2x128xf32>
    %c6 = arith.constant 6 : index
    %c0_15 = arith.constant 0 : index
    %80 = vector.load %arg5[%c6, %c0_15] : memref<36x128xbf16, #tpu.memory_space<vmem>>, vector<1x128xbf16>
    %81 = arith.extf %80 : vector<1x128xbf16> to vector<1x128xf32>
    %82 = vector.extract_strided_slice %35 {offsets = [0, 6, 0], sizes = [2, 1, 128], strides = [1, 1, 1]} : vector<2x8x128xf32> to vector<2x1x128xf32>
    %83 = vector.shape_cast %82 : vector<2x1x128xf32> to vector<2x128xf32>
    %84 = vector.broadcast %81 : vector<1x128xf32> to vector<2x128xf32>
    %85 = arith.mulf %84, %83 : vector<2x128xf32>
    %86 = arith.addf %79, %85 : vector<2x128xf32>
    %c7 = arith.constant 7 : index
    %c0_16 = arith.constant 0 : index
    %87 = vector.load %arg5[%c7, %c0_16] : memref<36x128xbf16, #tpu.memory_space<vmem>>, vector<1x128xbf16>
    %88 = arith.extf %87 : vector<1x128xbf16> to vector<1x128xf32>
    %89 = vector.extract_strided_slice %35 {offsets = [0, 7, 0], sizes = [2, 1, 128], strides = [1, 1, 1]} : vector<2x8x128xf32> to vector<2x1x128xf32>
    %90 = vector.shape_cast %89 : vector<2x1x128xf32> to vector<2x128xf32>
    %91 = vector.broadcast %88 : vector<1x128xf32> to vector<2x128xf32>
    %92 = arith.mulf %91, %90 : vector<2x128xf32>
    %93 = arith.addf %86, %92 : vector<2x128xf32>
    %94 = arith.mulf %93, %93 : vector<2x128xf32>
    %95 = arith.addf %36, %94 : vector<2x128xf32>
    %cst_17 = arith.constant 0.000000e+00 : f32
    %96 = vector.broadcast %cst_17 : f32 to vector<2x128xf32>
    %c8 = arith.constant 8 : index
    %c0_18 = arith.constant 0 : index
    %97 = vector.load %arg5[%c8, %c0_18] : memref<36x128xbf16, #tpu.memory_space<vmem>>, vector<1x128xbf16>
    %98 = arith.extf %97 : vector<1x128xbf16> to vector<1x128xf32>
    %99 = vector.extract_strided_slice %35 {offsets = [0, 1, 0], sizes = [2, 1, 128], strides = [1, 1, 1]} : vector<2x8x128xf32> to vector<2x1x128xf32>
    %100 = vector.shape_cast %99 : vector<2x1x128xf32> to vector<2x128xf32>
    %101 = vector.broadcast %98 : vector<1x128xf32> to vector<2x128xf32>
    %102 = arith.mulf %101, %100 : vector<2x128xf32>
    %103 = arith.addf %96, %102 : vector<2x128xf32>
    %c9 = arith.constant 9 : index
    %c0_19 = arith.constant 0 : index
    %104 = vector.load %arg5[%c9, %c0_19] : memref<36x128xbf16, #tpu.memory_space<vmem>>, vector<1x128xbf16>
    %105 = arith.extf %104 : vector<1x128xbf16> to vector<1x128xf32>
    %106 = vector.extract_strided_slice %35 {offsets = [0, 2, 0], sizes = [2, 1, 128], strides = [1, 1, 1]} : vector<2x8x128xf32> to vector<2x1x128xf32>
    %107 = vector.shape_cast %106 : vector<2x1x128xf32> to vector<2x128xf32>
    %108 = vector.broadcast %105 : vector<1x128xf32> to vector<2x128xf32>
    %109 = arith.mulf %108, %107 : vector<2x128xf32>
    %110 = arith.addf %103, %109 : vector<2x128xf32>
    %c10 = arith.constant 10 : index
    %c0_20 = arith.constant 0 : index
    %111 = vector.load %arg5[%c10, %c0_20] : memref<36x128xbf16, #tpu.memory_space<vmem>>, vector<1x128xbf16>
    %112 = arith.extf %111 : vector<1x128xbf16> to vector<1x128xf32>
    %113 = vector.extract_strided_slice %35 {offsets = [0, 3, 0], sizes = [2, 1, 128], strides = [1, 1, 1]} : vector<2x8x128xf32> to vector<2x1x128xf32>
    %114 = vector.shape_cast %113 : vector<2x1x128xf32> to vector<2x128xf32>
    %115 = vector.broadcast %112 : vector<1x128xf32> to vector<2x128xf32>
    %116 = arith.mulf %115, %114 : vector<2x128xf32>
    %117 = arith.addf %110, %116 : vector<2x128xf32>
    %c11 = arith.constant 11 : index
    %c0_21 = arith.constant 0 : index
    %118 = vector.load %arg5[%c11, %c0_21] : memref<36x128xbf16, #tpu.memory_space<vmem>>, vector<1x128xbf16>
    %119 = arith.extf %118 : vector<1x128xbf16> to vector<1x128xf32>
    %120 = vector.extract_strided_slice %35 {offsets = [0, 4, 0], sizes = [2, 1, 128], strides = [1, 1, 1]} : vector<2x8x128xf32> to vector<2x1x128xf32>
    %121 = vector.shape_cast %120 : vector<2x1x128xf32> to vector<2x128xf32>
    %122 = vector.broadcast %119 : vector<1x128xf32> to vector<2x128xf32>
    %123 = arith.mulf %122, %121 : vector<2x128xf32>
    %124 = arith.addf %117, %123 : vector<2x128xf32>
    %c12 = arith.constant 12 : index
    %c0_22 = arith.constant 0 : index
    %125 = vector.load %arg5[%c12, %c0_22] : memref<36x128xbf16, #tpu.memory_space<vmem>>, vector<1x128xbf16>
    %126 = arith.extf %125 : vector<1x128xbf16> to vector<1x128xf32>
    %127 = vector.extract_strided_slice %35 {offsets = [0, 5, 0], sizes = [2, 1, 128], strides = [1, 1, 1]} : vector<2x8x128xf32> to vector<2x1x128xf32>
    %128 = vector.shape_cast %127 : vector<2x1x128xf32> to vector<2x128xf32>
    %129 = vector.broadcast %126 : vector<1x128xf32> to vector<2x128xf32>
    %130 = arith.mulf %129, %128 : vector<2x128xf32>
    %131 = arith.addf %124, %130 : vector<2x128xf32>
    %c13 = arith.constant 13 : index
    %c0_23 = arith.constant 0 : index
    %132 = vector.load %arg5[%c13, %c0_23] : memref<36x128xbf16, #tpu.memory_space<vmem>>, vector<1x128xbf16>
    %133 = arith.extf %132 : vector<1x128xbf16> to vector<1x128xf32>
    %134 = vector.extract_strided_slice %35 {offsets = [0, 6, 0], sizes = [2, 1, 128], strides = [1, 1, 1]} : vector<2x8x128xf32> to vector<2x1x128xf32>
    %135 = vector.shape_cast %134 : vector<2x1x128xf32> to vector<2x128xf32>
    %136 = vector.broadcast %133 : vector<1x128xf32> to vector<2x128xf32>
    %137 = arith.mulf %136, %135 : vector<2x128xf32>
    %138 = arith.addf %131, %137 : vector<2x128xf32>
    %c14 = arith.constant 14 : index
    %c0_24 = arith.constant 0 : index
    %139 = vector.load %arg5[%c14, %c0_24] : memref<36x128xbf16, #tpu.memory_space<vmem>>, vector<1x128xbf16>
    %140 = arith.extf %139 : vector<1x128xbf16> to vector<1x128xf32>
    %141 = vector.extract_strided_slice %35 {offsets = [0, 7, 0], sizes = [2, 1, 128], strides = [1, 1, 1]} : vector<2x8x128xf32> to vector<2x1x128xf32>
    %142 = vector.shape_cast %141 : vector<2x1x128xf32> to vector<2x128xf32>
    %143 = vector.broadcast %140 : vector<1x128xf32> to vector<2x128xf32>
    %144 = arith.mulf %143, %142 : vector<2x128xf32>
    %145 = arith.addf %138, %144 : vector<2x128xf32>
    %146 = arith.mulf %145, %145 : vector<2x128xf32>
    %147 = arith.addf %95, %146 : vector<2x128xf32>
    %cst_25 = arith.constant 0.000000e+00 : f32
    %148 = vector.broadcast %cst_25 : f32 to vector<2x128xf32>
    %c15 = arith.constant 15 : index
    %c0_26 = arith.constant 0 : index
    %149 = vector.load %arg5[%c15, %c0_26] : memref<36x128xbf16, #tpu.memory_space<vmem>>, vector<1x128xbf16>
    %150 = arith.extf %149 : vector<1x128xbf16> to vector<1x128xf32>
    %151 = vector.extract_strided_slice %35 {offsets = [0, 2, 0], sizes = [2, 1, 128], strides = [1, 1, 1]} : vector<2x8x128xf32> to vector<2x1x128xf32>
    %152 = vector.shape_cast %151 : vector<2x1x128xf32> to vector<2x128xf32>
    %153 = vector.broadcast %150 : vector<1x128xf32> to vector<2x128xf32>
    %154 = arith.mulf %153, %152 : vector<2x128xf32>
    %155 = arith.addf %148, %154 : vector<2x128xf32>
    %c16 = arith.constant 16 : index
    %c0_27 = arith.constant 0 : index
    %156 = vector.load %arg5[%c16, %c0_27] : memref<36x128xbf16, #tpu.memory_space<vmem>>, vector<1x128xbf16>
    %157 = arith.extf %156 : vector<1x128xbf16> to vector<1x128xf32>
    %158 = vector.extract_strided_slice %35 {offsets = [0, 3, 0], sizes = [2, 1, 128], strides = [1, 1, 1]} : vector<2x8x128xf32> to vector<2x1x128xf32>
    %159 = vector.shape_cast %158 : vector<2x1x128xf32> to vector<2x128xf32>
    %160 = vector.broadcast %157 : vector<1x128xf32> to vector<2x128xf32>
    %161 = arith.mulf %160, %159 : vector<2x128xf32>
    %162 = arith.addf %155, %161 : vector<2x128xf32>
    %c17 = arith.constant 17 : index
    %c0_28 = arith.constant 0 : index
    %163 = vector.load %arg5[%c17, %c0_28] : memref<36x128xbf16, #tpu.memory_space<vmem>>, vector<1x128xbf16>
    %164 = arith.extf %163 : vector<1x128xbf16> to vector<1x128xf32>
    %165 = vector.extract_strided_slice %35 {offsets = [0, 4, 0], sizes = [2, 1, 128], strides = [1, 1, 1]} : vector<2x8x128xf32> to vector<2x1x128xf32>
    %166 = vector.shape_cast %165 : vector<2x1x128xf32> to vector<2x128xf32>
    %167 = vector.broadcast %164 : vector<1x128xf32> to vector<2x128xf32>
    %168 = arith.mulf %167, %166 : vector<2x128xf32>
    %169 = arith.addf %162, %168 : vector<2x128xf32>
    %c18 = arith.constant 18 : index
    %c0_29 = arith.constant 0 : index
    %170 = vector.load %arg5[%c18, %c0_29] : memref<36x128xbf16, #tpu.memory_space<vmem>>, vector<1x128xbf16>
    %171 = arith.extf %170 : vector<1x128xbf16> to vector<1x128xf32>
    %172 = vector.extract_strided_slice %35 {offsets = [0, 5, 0], sizes = [2, 1, 128], strides = [1, 1, 1]} : vector<2x8x128xf32> to vector<2x1x128xf32>
    %173 = vector.shape_cast %172 : vector<2x1x128xf32> to vector<2x128xf32>
    %174 = vector.broadcast %171 : vector<1x128xf32> to vector<2x128xf32>
    %175 = arith.mulf %174, %173 : vector<2x128xf32>
    %176 = arith.addf %169, %175 : vector<2x128xf32>
    %c19 = arith.constant 19 : index
    %c0_30 = arith.constant 0 : index
    %177 = vector.load %arg5[%c19, %c0_30] : memref<36x128xbf16, #tpu.memory_space<vmem>>, vector<1x128xbf16>
    %178 = arith.extf %177 : vector<1x128xbf16> to vector<1x128xf32>
    %179 = vector.extract_strided_slice %35 {offsets = [0, 6, 0], sizes = [2, 1, 128], strides = [1, 1, 1]} : vector<2x8x128xf32> to vector<2x1x128xf32>
    %180 = vector.shape_cast %179 : vector<2x1x128xf32> to vector<2x128xf32>
    %181 = vector.broadcast %178 : vector<1x128xf32> to vector<2x128xf32>
    %182 = arith.mulf %181, %180 : vector<2x128xf32>
    %183 = arith.addf %176, %182 : vector<2x128xf32>
    %c20 = arith.constant 20 : index
    %c0_31 = arith.constant 0 : index
    %184 = vector.load %arg5[%c20, %c0_31] : memref<36x128xbf16, #tpu.memory_space<vmem>>, vector<1x128xbf16>
    %185 = arith.extf %184 : vector<1x128xbf16> to vector<1x128xf32>
    %186 = vector.extract_strided_slice %35 {offsets = [0, 7, 0], sizes = [2, 1, 128], strides = [1, 1, 1]} : vector<2x8x128xf32> to vector<2x1x128xf32>
    %187 = vector.shape_cast %186 : vector<2x1x128xf32> to vector<2x128xf32>
    %188 = vector.broadcast %185 : vector<1x128xf32> to vector<2x128xf32>
    %189 = arith.mulf %188, %187 : vector<2x128xf32>
    %190 = arith.addf %183, %189 : vector<2x128xf32>
    %191 = arith.mulf %190, %190 : vector<2x128xf32>
    %192 = arith.addf %147, %191 : vector<2x128xf32>
    %cst_32 = arith.constant 0.000000e+00 : f32
    %193 = vector.broadcast %cst_32 : f32 to vector<2x128xf32>
    %c21 = arith.constant 21 : index
    %c0_33 = arith.constant 0 : index
    %194 = vector.load %arg5[%c21, %c0_33] : memref<36x128xbf16, #tpu.memory_space<vmem>>, vector<1x128xbf16>
    %195 = arith.extf %194 : vector<1x128xbf16> to vector<1x128xf32>
    %196 = vector.extract_strided_slice %35 {offsets = [0, 3, 0], sizes = [2, 1, 128], strides = [1, 1, 1]} : vector<2x8x128xf32> to vector<2x1x128xf32>
    %197 = vector.shape_cast %196 : vector<2x1x128xf32> to vector<2x128xf32>
    %198 = vector.broadcast %195 : vector<1x128xf32> to vector<2x128xf32>
    %199 = arith.mulf %198, %197 : vector<2x128xf32>
    %200 = arith.addf %193, %199 : vector<2x128xf32>
    %c22 = arith.constant 22 : index
    %c0_34 = arith.constant 0 : index
    %201 = vector.load %arg5[%c22, %c0_34] : memref<36x128xbf16, #tpu.memory_space<vmem>>, vector<1x128xbf16>
    %202 = arith.extf %201 : vector<1x128xbf16> to vector<1x128xf32>
    %203 = vector.extract_strided_slice %35 {offsets = [0, 4, 0], sizes = [2, 1, 128], strides = [1, 1, 1]} : vector<2x8x128xf32> to vector<2x1x128xf32>
    %204 = vector.shape_cast %203 : vector<2x1x128xf32> to vector<2x128xf32>
    %205 = vector.broadcast %202 : vector<1x128xf32> to vector<2x128xf32>
    %206 = arith.mulf %205, %204 : vector<2x128xf32>
    %207 = arith.addf %200, %206 : vector<2x128xf32>
    %c23 = arith.constant 23 : index
    %c0_35 = arith.constant 0 : index
    %208 = vector.load %arg5[%c23, %c0_35] : memref<36x128xbf16, #tpu.memory_space<vmem>>, vector<1x128xbf16>
    %209 = arith.extf %208 : vector<1x128xbf16> to vector<1x128xf32>
    %210 = vector.extract_strided_slice %35 {offsets = [0, 5, 0], sizes = [2, 1, 128], strides = [1, 1, 1]} : vector<2x8x128xf32> to vector<2x1x128xf32>
    %211 = vector.shape_cast %210 : vector<2x1x128xf32> to vector<2x128xf32>
    %212 = vector.broadcast %209 : vector<1x128xf32> to vector<2x128xf32>
    %213 = arith.mulf %212, %211 : vector<2x128xf32>
    %214 = arith.addf %207, %213 : vector<2x128xf32>
    %c24 = arith.constant 24 : index
    %c0_36 = arith.constant 0 : index
    %215 = vector.load %arg5[%c24, %c0_36] : memref<36x128xbf16, #tpu.memory_space<vmem>>, vector<1x128xbf16>
    %216 = arith.extf %215 : vector<1x128xbf16> to vector<1x128xf32>
    %217 = vector.extract_strided_slice %35 {offsets = [0, 6, 0], sizes = [2, 1, 128], strides = [1, 1, 1]} : vector<2x8x128xf32> to vector<2x1x128xf32>
    %218 = vector.shape_cast %217 : vector<2x1x128xf32> to vector<2x128xf32>
    %219 = vector.broadcast %216 : vector<1x128xf32> to vector<2x128xf32>
    %220 = arith.mulf %219, %218 : vector<2x128xf32>
    %221 = arith.addf %214, %220 : vector<2x128xf32>
    %c25 = arith.constant 25 : index
    %c0_37 = arith.constant 0 : index
    %222 = vector.load %arg5[%c25, %c0_37] : memref<36x128xbf16, #tpu.memory_space<vmem>>, vector<1x128xbf16>
    %223 = arith.extf %222 : vector<1x128xbf16> to vector<1x128xf32>
    %224 = vector.extract_strided_slice %35 {offsets = [0, 7, 0], sizes = [2, 1, 128], strides = [1, 1, 1]} : vector<2x8x128xf32> to vector<2x1x128xf32>
    %225 = vector.shape_cast %224 : vector<2x1x128xf32> to vector<2x128xf32>
    %226 = vector.broadcast %223 : vector<1x128xf32> to vector<2x128xf32>
    %227 = arith.mulf %226, %225 : vector<2x128xf32>
    %228 = arith.addf %221, %227 : vector<2x128xf32>
    %229 = arith.mulf %228, %228 : vector<2x128xf32>
    %230 = arith.addf %192, %229 : vector<2x128xf32>
    %cst_38 = arith.constant 0.000000e+00 : f32
    %231 = vector.broadcast %cst_38 : f32 to vector<2x128xf32>
    %c26 = arith.constant 26 : index
    %c0_39 = arith.constant 0 : index
    %232 = vector.load %arg5[%c26, %c0_39] : memref<36x128xbf16, #tpu.memory_space<vmem>>, vector<1x128xbf16>
    %233 = arith.extf %232 : vector<1x128xbf16> to vector<1x128xf32>
    %234 = vector.extract_strided_slice %35 {offsets = [0, 4, 0], sizes = [2, 1, 128], strides = [1, 1, 1]} : vector<2x8x128xf32> to vector<2x1x128xf32>
    %235 = vector.shape_cast %234 : vector<2x1x128xf32> to vector<2x128xf32>
    %236 = vector.broadcast %233 : vector<1x128xf32> to vector<2x128xf32>
    %237 = arith.mulf %236, %235 : vector<2x128xf32>
    %238 = arith.addf %231, %237 : vector<2x128xf32>
    %c27 = arith.constant 27 : index
    %c0_40 = arith.constant 0 : index
    %239 = vector.load %arg5[%c27, %c0_40] : memref<36x128xbf16, #tpu.memory_space<vmem>>, vector<1x128xbf16>
    %240 = arith.extf %239 : vector<1x128xbf16> to vector<1x128xf32>
    %241 = vector.extract_strided_slice %35 {offsets = [0, 5, 0], sizes = [2, 1, 128], strides = [1, 1, 1]} : vector<2x8x128xf32> to vector<2x1x128xf32>
    %242 = vector.shape_cast %241 : vector<2x1x128xf32> to vector<2x128xf32>
    %243 = vector.broadcast %240 : vector<1x128xf32> to vector<2x128xf32>
    %244 = arith.mulf %243, %242 : vector<2x128xf32>
    %245 = arith.addf %238, %244 : vector<2x128xf32>
    %c28 = arith.constant 28 : index
    %c0_41 = arith.constant 0 : index
    %246 = vector.load %arg5[%c28, %c0_41] : memref<36x128xbf16, #tpu.memory_space<vmem>>, vector<1x128xbf16>
    %247 = arith.extf %246 : vector<1x128xbf16> to vector<1x128xf32>
    %248 = vector.extract_strided_slice %35 {offsets = [0, 6, 0], sizes = [2, 1, 128], strides = [1, 1, 1]} : vector<2x8x128xf32> to vector<2x1x128xf32>
    %249 = vector.shape_cast %248 : vector<2x1x128xf32> to vector<2x128xf32>
    %250 = vector.broadcast %247 : vector<1x128xf32> to vector<2x128xf32>
    %251 = arith.mulf %250, %249 : vector<2x128xf32>
    %252 = arith.addf %245, %251 : vector<2x128xf32>
    %c29 = arith.constant 29 : index
    %c0_42 = arith.constant 0 : index
    %253 = vector.load %arg5[%c29, %c0_42] : memref<36x128xbf16, #tpu.memory_space<vmem>>, vector<1x128xbf16>
    %254 = arith.extf %253 : vector<1x128xbf16> to vector<1x128xf32>
    %255 = vector.extract_strided_slice %35 {offsets = [0, 7, 0], sizes = [2, 1, 128], strides = [1, 1, 1]} : vector<2x8x128xf32> to vector<2x1x128xf32>
    %256 = vector.shape_cast %255 : vector<2x1x128xf32> to vector<2x128xf32>
    %257 = vector.broadcast %254 : vector<1x128xf32> to vector<2x128xf32>
    %258 = arith.mulf %257, %256 : vector<2x128xf32>
    %259 = arith.addf %252, %258 : vector<2x128xf32>
    %260 = arith.mulf %259, %259 : vector<2x128xf32>
    %261 = arith.addf %230, %260 : vector<2x128xf32>
    %cst_43 = arith.constant 0.000000e+00 : f32
    %262 = vector.broadcast %cst_43 : f32 to vector<2x128xf32>
    %c30 = arith.constant 30 : index
    %c0_44 = arith.constant 0 : index
    %263 = vector.load %arg5[%c30, %c0_44] : memref<36x128xbf16, #tpu.memory_space<vmem>>, vector<1x128xbf16>
    %264 = arith.extf %263 : vector<1x128xbf16> to vector<1x128xf32>
    %265 = vector.extract_strided_slice %35 {offsets = [0, 5, 0], sizes = [2, 1, 128], strides = [1, 1, 1]} : vector<2x8x128xf32> to vector<2x1x128xf32>
    %266 = vector.shape_cast %265 : vector<2x1x128xf32> to vector<2x128xf32>
    %267 = vector.broadcast %264 : vector<1x128xf32> to vector<2x128xf32>
    %268 = arith.mulf %267, %266 : vector<2x128xf32>
    %269 = arith.addf %262, %268 : vector<2x128xf32>
    %c31 = arith.constant 31 : index
    %c0_45 = arith.constant 0 : index
    %270 = vector.load %arg5[%c31, %c0_45] : memref<36x128xbf16, #tpu.memory_space<vmem>>, vector<1x128xbf16>
    %271 = arith.extf %270 : vector<1x128xbf16> to vector<1x128xf32>
    %272 = vector.extract_strided_slice %35 {offsets = [0, 6, 0], sizes = [2, 1, 128], strides = [1, 1, 1]} : vector<2x8x128xf32> to vector<2x1x128xf32>
    %273 = vector.shape_cast %272 : vector<2x1x128xf32> to vector<2x128xf32>
    %274 = vector.broadcast %271 : vector<1x128xf32> to vector<2x128xf32>
    %275 = arith.mulf %274, %273 : vector<2x128xf32>
    %276 = arith.addf %269, %275 : vector<2x128xf32>
    %c32 = arith.constant 32 : index
    %c0_46 = arith.constant 0 : index
    %277 = vector.load %arg5[%c32, %c0_46] : memref<36x128xbf16, #tpu.memory_space<vmem>>, vector<1x128xbf16>
    %278 = arith.extf %277 : vector<1x128xbf16> to vector<1x128xf32>
    %279 = vector.extract_strided_slice %35 {offsets = [0, 7, 0], sizes = [2, 1, 128], strides = [1, 1, 1]} : vector<2x8x128xf32> to vector<2x1x128xf32>
    %280 = vector.shape_cast %279 : vector<2x1x128xf32> to vector<2x128xf32>
    %281 = vector.broadcast %278 : vector<1x128xf32> to vector<2x128xf32>
    %282 = arith.mulf %281, %280 : vector<2x128xf32>
    %283 = arith.addf %276, %282 : vector<2x128xf32>
    %284 = arith.mulf %283, %283 : vector<2x128xf32>
    %285 = arith.addf %261, %284 : vector<2x128xf32>
    %cst_47 = arith.constant 0.000000e+00 : f32
    %286 = vector.broadcast %cst_47 : f32 to vector<2x128xf32>
    %c33 = arith.constant 33 : index
    %c0_48 = arith.constant 0 : index
    %287 = vector.load %arg5[%c33, %c0_48] : memref<36x128xbf16, #tpu.memory_space<vmem>>, vector<1x128xbf16>
    %288 = arith.extf %287 : vector<1x128xbf16> to vector<1x128xf32>
    %289 = vector.extract_strided_slice %35 {offsets = [0, 6, 0], sizes = [2, 1, 128], strides = [1, 1, 1]} : vector<2x8x128xf32> to vector<2x1x128xf32>
    %290 = vector.shape_cast %289 : vector<2x1x128xf32> to vector<2x128xf32>
    %291 = vector.broadcast %288 : vector<1x128xf32> to vector<2x128xf32>
    %292 = arith.mulf %291, %290 : vector<2x128xf32>
    %293 = arith.addf %286, %292 : vector<2x128xf32>
    %c34 = arith.constant 34 : index
    %c0_49 = arith.constant 0 : index
    %294 = vector.load %arg5[%c34, %c0_49] : memref<36x128xbf16, #tpu.memory_space<vmem>>, vector<1x128xbf16>
    %295 = arith.extf %294 : vector<1x128xbf16> to vector<1x128xf32>
    %296 = vector.extract_strided_slice %35 {offsets = [0, 7, 0], sizes = [2, 1, 128], strides = [1, 1, 1]} : vector<2x8x128xf32> to vector<2x1x128xf32>
    %297 = vector.shape_cast %296 : vector<2x1x128xf32> to vector<2x128xf32>
    %298 = vector.broadcast %295 : vector<1x128xf32> to vector<2x128xf32>
    %299 = arith.mulf %298, %297 : vector<2x128xf32>
    %300 = arith.addf %293, %299 : vector<2x128xf32>
    %301 = arith.mulf %300, %300 : vector<2x128xf32>
    %302 = arith.addf %285, %301 : vector<2x128xf32>
    %cst_50 = arith.constant 0.000000e+00 : f32
    %303 = vector.broadcast %cst_50 : f32 to vector<2x128xf32>
    %c35 = arith.constant 35 : index
    %c0_51 = arith.constant 0 : index
    %304 = vector.load %arg5[%c35, %c0_51] : memref<36x128xbf16, #tpu.memory_space<vmem>>, vector<1x128xbf16>
    %305 = arith.extf %304 : vector<1x128xbf16> to vector<1x128xf32>
    %306 = vector.extract_strided_slice %35 {offsets = [0, 7, 0], sizes = [2, 1, 128], strides = [1, 1, 1]} : vector<2x8x128xf32> to vector<2x1x128xf32>
    %307 = vector.shape_cast %306 : vector<2x1x128xf32> to vector<2x128xf32>
    %308 = vector.broadcast %305 : vector<1x128xf32> to vector<2x128xf32>
    %309 = arith.mulf %308, %307 : vector<2x128xf32>
    %310 = arith.addf %303, %309 : vector<2x128xf32>
    %311 = arith.mulf %310, %310 : vector<2x128xf32>
    %312 = arith.addf %302, %311 : vector<2x128xf32>
    %313 = math.sqrt %312 : vector<2x128xf32>
    %cst_52 = arith.constant dense<0xFF800000> : vector<128xf32>
    %314 = vector.multi_reduction <maximumf>, %313, %cst_52 [0] : vector<2x128xf32> to vector<128xf32>
    %315 = vector.shape_cast %314 : vector<128xf32> to vector<1x128xf32>
    %c0_53 = arith.constant 0 : index
    %c0_54 = arith.constant 0 : index
    %316 = vector.load %arg7[%c0_53, %c0_54] : memref<1x128xf32, #tpu.memory_space<vmem>>, vector<1x128xf32>
    tpu.vector_store %arg7[%c0_53, %c0_54], %315 {strides = array<i32>} : memref<1x128xf32, #tpu.memory_space<vmem>>, vector<1x128xf32>,
    %c0_55 = arith.constant 0 : index
    %317 = memref.load %arg1[%c0_55] : memref<4xf32, #tpu.memory_space<smem>>
    %c3_56 = arith.constant 3 : index
    %318 = memref.load %arg1[%c3_56] : memref<4xf32, #tpu.memory_space<smem>>
    %c2_57 = arith.constant 2 : index
    %319 = memref.load %arg1[%c2_57] : memref<4xf32, #tpu.memory_space<smem>>
    %320 = arith.subf %318, %319 : f32
    %cst_58 = arith.constant 1.000000e+00 : f32
    %321 = arith.divf %cst_58, %320 : f32
    %322 = vector.broadcast %317 : f32 to vector<2x128xf32>
    %323 = arith.subf %313, %322 : vector<2x128xf32>
    %324 = vector.broadcast %321 : f32 to vector<2x128xf32>
    %325 = arith.mulf %323, %324 : vector<2x128xf32>
    %cst_59 = arith.constant 5.000000e-01 : f32
    %326 = vector.broadcast %cst_59 : f32 to vector<2x128xf32>
    %327 = arith.addf %325, %326 : vector<2x128xf32>
    %cst_60 = arith.constant 0.000000e+00 : f32
    %cst_61 = arith.constant 1.000000e+00 : f32
    %328 = vector.broadcast %cst_60 : f32 to vector<2x128xf32>
    %329 = arith.maximumf %328, %327 : vector<2x128xf32>
    %330 = vector.broadcast %cst_61 : f32 to vector<2x128xf32>
    %331 = arith.minimumf %330, %329 : vector<2x128xf32>
    %c0_62 = arith.constant 0 : index
    %c0_63 = arith.constant 0 : index
    %332 = vector.load %arg6[%c0_62, %c0_63] : memref<2x128xf32, #tpu.memory_space<vmem>>, vector<2x128xf32>
    tpu.vector_store %arg6[%c0_62, %c0_63], %331 {strides = array<i32>} : memref<2x128xf32, #tpu.memory_space<vmem>>, vector<2x128xf32>,
    return
  }
  func.func @transform_0(%arg0: i32) -> i32 {
    %c0_i32 = arith.constant 0 : i32
    %c0_i32_0 = arith.constant 0 : i32
    return %c0_i32 : i32
  }
  func.func @transform_1(%arg0: i32) -> (i32, i32, i32) {
    %c0_i32 = arith.constant 0 : i32
    %c0_i32_0 = arith.constant 0 : i32
    %c0_i32_1 = arith.constant 0 : i32
    return %c0_i32, %c0_i32_0, %arg0 : i32, i32, i32
  }
  func.func @transform_2(%arg0: i32) -> (i32, i32) {
    %c0_i32 = arith.constant 0 : i32
    %c0_i32_0 = arith.constant 0 : i32
    %c0_i32_1 = arith.constant 0 : i32
    return %c0_i32, %c0_i32_0 : i32, i32
  }
  func.func @transform_3(%arg0: i32) -> (i32, i32) {
    %c0_i32 = arith.constant 0 : i32
    %c0_i32_0 = arith.constant 0 : i32
    return %c0_i32, %arg0 : i32, i32
  }
  func.func @transform_4(%arg0: i32) -> (i32, i32) {
    %c0_i32 = arith.constant 0 : i32
    %c0_i32_0 = arith.constant 0 : i32
    return %c0_i32, %arg0 : i32, i32
  }
  func.func @transform_5(%arg0: i32) -> (i32, i32) {
    %c0_i32 = arith.constant 0 : i32
    %c0_i32_0 = arith.constant 0 : i32
    return %c0_i32, %arg0 : i32, i32
  }
  func.func @transform_6(%arg0: i32) -> (i32, i32) {
    %c0_i32 = arith.constant 0 : i32
    %c0_i32_0 = arith.constant 0 : i32
    return %c0_i32, %arg0 : i32, i32
  }
}

</mosaic_0001>

<bundles_post_ra>
// kernel: tpu_custom_call.1
= control target key start
LH: loop header
LB: loop body
LE: loop exit
PB: predicated region body
PF: predicated region fallthrough
CT: control target
= control target key end

     0   :  { %s1560_s0 = inlined_call_operand.vmem [shape: f32[4], index: 0, kind: input, shape index: {}]   ;;  %s1561_s1 = inlined_call_operand.hbm [shape: f32[2,4,256], index: 1, kind: input, shape index: {}]   ;;  %s1562_s2 = inlined_call_operand.vmem [shape: f32[8,4], index: 2, kind: input, shape index: {}]   ;;  %s1563_s3 = inlined_call_operand.vmem [shape: bf16[8,256], index: 3, kind: input, shape index: {}]   ;;  %s1564_s4 = inlined_call_operand.hbm [shape: bf16[36,256], index: 4, kind: input, shape index: {}]   ;;  %s1565_s5 = inlined_call_operand.hbm [shape: f32[2,256], index: 5, kind: output, shape index: {0}]   ;;  %s1566_s6 = inlined_call_operand.hbm [shape: f32[1,256], index: 6, kind: output, shape index: {1}]  }
   0x1   :  { %1572 = sst [smem:[#allocation21_spill]] %s1560_s0 }
   0x2   :  { %1573 = sst [smem:[#allocation22_spill]] %s1561_s1 }
   0x3   :  { %12 = vsyncpa [#allocation5], 0 }
   0x4   :  { %13 = vsyncpa [#allocation3], 0 }
   0x5   :  { %15 = vsyncpa [#allocation3 + $0x1], 0 }
   0x6   :  { %16 = vsyncpa [#allocation8], 0 }
   0x7   :  { %18 = vsyncpa [#allocation8 + $0x1], 0 }
   0x8   :  { %19 = vsyncpa [#allocation4], 0 }
   0x9   :  { %21 = vsyncpa [#allocation4 + $0x1], 0 }
   0xa   :  { %22 = vsyncpa [#allocation11], 0 }
   0xb   :  { %24 = vsyncpa [#allocation11 + $0x1], 0  ;;  %s1152_s21 = smov 0   ;;  %s1154_s22 = smov 0  }
   0xc   :  { %s1156_s23 = smov 0   ;;  %s1158_s24 = smov 0  }
   0xd LB: > { %1574 = sst [smem:[#allocation17_spill]] %s1103_s23  ;;  %s1173_s25 = sadd.s32 4294967295, %s1107_s24   ;;  %s1107_s24 = sphi %s1158_s24, %s1591_s24   ;;  %s1103_s23 = sphi %s1156_s23, %s1593_s23   ;;  %s1099_s22 = sphi %s1154_s22, %s1595_s22   ;;  %s1095_s21 = sphi %s1152_s21, %s1594_s21  }
   0xe   : > { %s821_s26 = sadd.s32 4294967294, %s1107_s24   ;;  %s1177_s27 = sadd.s32 1, %s1107_s24  }
   0xf   : > { %1575 = sst [smem:[#allocation18_spill]] %s1177_s27  ;;  %s58_s28 = sadd.s32 1, %s1103_s23 }
  0x10   : > { %s55_s29 = ssub.s32 %s1107_s24, %s1177_s27  ;;  %p65_p0 = scmp.ne.s32.totalorder %s1103_s23, %s1099_s22 }
  0x11   : > { %p56_p1 = scmp.eq.s32.totalorder %s55_s29, 0  ;;  %p66_p2 = scmp.eq.s32.totalorder %s1107_s24, 0 }
  0x12   : > { %p71_p3 = scmp.ne.s32.totalorder %s1099_s22, %s1095_s21  ;;  %p72_p4 = scmp.eq.s32.totalorder %s1173_s25, 0 }
  0x13   : > { %s1189_s30 = scalar_select %p56_p1, %s1103_s23, %s58_s28  }
  0x14   : > { %p1191_p5 = por %p66_p2, %p65_p0  ;;  %p1197_p6 = por %p72_p4, %p71_p3 }
  0x15   : > { %1576 = sst [smem:[#allocation19_spill]] %s1189_s30  ;;  %p168_p7 = scmp.eq.s32.totalorder %s1173_s25, 1 }
  0x16   : > { %p174_p8 = scmp.eq.s32.totalorder %s821_s26, 1  ;;  %p822_p9 = scmp.ge.s32.totalorder %s1107_s24, 1 }
  0x17   : > { %p207_p10 = scmp.lt.s32.totalorder %s1107_s24, 3  ;;  %p1204_p11 = por %p168_p7, %p65_p0 }
  0x18   : > { %p1208_p12 = por %p174_p8, %p71_p3  ;;  %s1583_s0 = sld [smem:[#allocation21_spill]] }
  0x19   : > { %p1212_p13 = pnand %p822_p9, %p207_p10  ;;  %p874_p2 = scmp.lt.s32.totalorder %s1107_s24, 2 }
  0x1a   : > { %s1580_s10 = scalar_select %p1208_p12, 1, 0 }
  0x1b   : > { %p855_p1 = pneg %p1212_p13  ;;  %s1226_s15 = sand.u32 1, %s1103_s23  }
  0x1c   : > { %1581 = sst [smem:[#allocation20_spill]] %s1580_s10  ;;  %p1230_p7 = pnand %p874_p2, %p1191_p5 }
  0x1d   : > { %p856_p3 = pnand %p855_p1, %p72_p4  ;;  %s825_s17 = sshll.u32 %s1226_s15, 3 }
  0x1e   : > { %s219_s14 = sshll.u32 %s1583_s0, 4  ;;  %s1109_s18 = smov [#allocation2]   ;;  %s220_s14 = int_to_ptr.vmem [resolvable:$true] %s219_s14 }
  0x1f   : > { %858 = dma.vmem_to_smem (!%p856_p3), %s220_s14, 16, %s1109_s18, [#allocation5]  }
  0x20   : > { %s1567_s19 = sshll.u32 %s1107_s24, 2  ;;  %s237_s20 = scalar_lea.vmem [#allocation6], %s825_s17 }
  0x21   : > { %s244_s26 = sshll.u32 %s237_s20, 4  ;;  %s1585_s1 = sld [smem:[#allocation22_spill]]  ;;  %s245_s26 = int_to_ptr.vmem [resolvable:$true] %s244_s26 }
  0x22   : > { %s234_s13 = scalar_lea.sflag [#allocation3], %s1226_s15  ;;  %p945_p8 = pneg %p1230_p7 }
  0x27   : > { %s241_s12 = scalar_lea.hbm %s1585_s1, %s1567_s19  ;;  %s948_s18 = scalar_lea.hbm %s1585_s1, 16 }
  0x28   : > { %s242_s7 = sshll.u32 %s241_s12, 4  ;;  %s243_s7 = int_to_ptr.hbm [resolvable:$true] %s242_s7 }
  0x29   : > { %s941_s0 = sshra.s32 %s243_s7, 4  ;;  %s942_s0 = int_to_ptr.hbm [resolvable:$true] %s941_s0 }
  0x2a   : > { %s943_s30 = scalar_lea.hbm %s942_s0, 8  ;;  %p949_p1 = scmp.lt.s32.totalorder %s942_s0, %s1585_s1 }
  0x2b   : > { %p944_p5 = scmp.ne.s32.totalorder %s942_s0, %s943_s30  ;;  %p950_p2 = scmp.lt.s32.totalorder %s948_s18, %s943_s30 }
  0x2d   : > { %p946_p9 = pnand %p945_p8, %p944_p5  ;;  %p951_p3 = por %p950_p2, %p949_p1 }
  0x2f   : > { %p947_p10 = pneg %p946_p9 }
  0x31   : > { %p952_p0 = pnand %p951_p3, %p947_p10 }
  0x33   : > { %955 = shalt.err (!%p952_p0)
}
  0x34   : > { %s1110_s29 = smov 128   ;;  %s1111_s12 = smov 64  }
  0x35   : > { %s1112_s19 = smov 4   ;;  %s839_s14 = smul.u32 20, %s1226_s15 }
  0x36   : > { %862 = dma.hbm_to_vmem [thread:$0]  (!%p1230_p7), %s243_s7, 128, %s245_s26, %s234_s13, %s1110_s29, %s1111_s12, %s1112_s19  }
  0x37   : > { %s1586_s17 = sshll.u32 %s1107_s24, 2  ;;  %s265_s18 = scalar_lea.vmem [#allocation7], %s839_s14 }
  0x38   : > { %s269_s0 = scalar_lea.hbm %s1564_s4, %s1586_s17  ;;  %s272_s20 = sshll.u32 %s265_s18, 4  ;;  %s273_s20 = int_to_ptr.vmem [resolvable:$true] %s272_s20 }
  0x39   : > { %s270_s30 = sshll.u32 %s269_s0, 4  ;;  %s262_s28 = scalar_lea.sflag [#allocation8], %s1226_s15  ;;  %s271_s30 = int_to_ptr.hbm [resolvable:$true] %s270_s30 }
  0x3a   : > { %s971_s1 = sshra.s32 %s271_s30, 4  ;;  %s978_s13 = scalar_lea.hbm %s1564_s4, 40  ;;  %s972_s1 = int_to_ptr.hbm [resolvable:$true] %s971_s1 }
  0x3b   : > { %s973_s10 = scalar_lea.hbm %s972_s1, 20  ;;  %p979_p10 = scmp.lt.s32.totalorder %s972_s1, %s1564_s4 }
  0x3c   : > { %p974_p0 = scmp.ne.s32.totalorder %s972_s1, %s973_s10  ;;  %p980_p1 = scmp.lt.s32.totalorder %s978_s13, %s973_s10 }
  0x3e   : > { %p976_p5 = pnand %p974_p0, %p945_p8  ;;  %p981_p2 = por %p980_p1, %p979_p10 }
  0x40   : > { %p977_p9 = pneg %p976_p5 }
  0x42   : > { %p982_p3 = pnand %p981_p2, %p977_p9 }
  0x44   : > { %985 = shalt.err (!%p982_p3)
}
  0x45   : > { %865 = dma.hbm_to_vmem [thread:$0]  (!%p1230_p7), %s271_s30, 320, %s273_s20, %s262_s28, %s1110_s29, %s1111_s12, %s1112_s19  }
  0x46   : > { %284 = sbr.rel (%p1212_p13) target bundleno = 304 (0x130), region = 40 }
  0x4b   : > { %1074 = dma.done.wait (%p72_p4), [#allocation5], 16  }
  0x4c   : > { %1076 = vsyncadd (%p72_p4), [#allocation5], 4294967280  ;;  %s1280_s15 = sand.u32 1, %s1099_s22  }
  0x4d   : > { %s830_s1 = sshll.u32 %s1280_s15, 3  ;;  %s292_s10 = scalar_lea.sflag [#allocation3], %s1280_s15 }
  0x4e   : > { %s1284_s14 = scalar_lea.vmem [#allocation6], %s830_s1 }
  0x4f   : > { %1078 = dma.done.wait (%p1197_p6), %s292_s10, 128  }
  0x50   : > { %1080 = vsyncadd (%p1197_p6), %s292_s10, 4294967168  ;;  %s840_s11 = smul.u32 20, %s1280_s15  ;;  %s302_s16 = scalar_lea.sflag [#allocation8], %s1280_s15 }
  0x52   : > { %s1292_s19 = scalar_lea.vmem [#allocation7], %s840_s11 }
  0x53   : > { %1082 = dma.done.wait (%p1197_p6), %s302_s16, 320  }
  0x54   : > { %1084 = vsyncadd (%p1197_p6), %s302_s16, 4294966976 }
  0x55   : > { %311 = sfence }
  0x56   : > { %v355_v0 = vld [vmem:[%s1562_s2] sm:$0xff]  ;;  %v1113_v1 = vmov 0   ;;  %v1114_v2 = vmov 2   ;;  %v1115_v3 = vmov 1   ;;  %v1116_v4 = vmov 3   ;;  %s833_s8 = sld [smem:[#allocation2 + $0x3]] }
  0x57   : > { %917 = vset.pattern.permute.xlu0 %v1113_v1  ;;  %919 = vset.pattern.permute.xlu1 %v1114_v2  ;;  %s834_s17 = sld [smem:[#allocation2 + $0x2]]  ;;  %p349_p4 = scmp.lt.s32.totalorder %s1173_s25, 1  ;;  %v1303_v6 = vld [vmem:[%s1284_s14] sm:$0xf]  ;;  %v1309_v8 = vld [vmem:[%s1284_s14 + $0x4] sm:$0xf] }
  0x58   : > { %360 = vperm.xlu0 %917, %v355_v0   ;;  %380 = vperm.xlu1 %919, %v355_v0   ;;  %v401_v9 = vld [vmem:[%s1292_s19] sm:$0x1]  ;;  %v363_v11 = vperm.slane %v1303_v6, 0  ;;  %v418_v12 = vld [vmem:[%s1292_s19] sm:$0x2]  ;;  %v364_v16 = vperm.slane %v1309_v8, 0 }
  0x59   : > { %s1306_s30 = scalar_select %p349_p4, %s1173_s25, 1  ;;  %v383_v17 = vperm.slane %v1303_v6, 2  ;;  %v402_v18 = vunpack.c.l.bf16 %v401_v9  ;;  %v434_v19 = vld [vmem:[%s1292_s19] sm:$0x4]  ;;  %v468_v20 = vld [vmem:[%s1292_s19 + $0x4] sm:$0x1]  ;;  %v419_v25 = vunpack.c.l.bf16 %v418_v12 }
  0x5a   : > { %v384_v23 = vperm.slane %v1309_v8, 2  ;;  %v373_v24 = vperm.slane %v1303_v6, 1  ;;  %v476_v26 = vld [vmem:[%s1292_s19 + $0x4] sm:$0x2]  ;;  %v1323_v27 = vld [vmem:[%s1292_s19 + $0x4] sm:$0x4]  ;;  %v435_v34 = vunpack.c.l.bf16 %v434_v19  ;;  %v469_v35 = vunpack.c.l.bf16 %v468_v20 }
  0x5b   : > { %s832_s18 = sshll.u32 %s1306_s30, 2  ;;  %v374_v29 = vperm.slane %v1309_v8, 1  ;;  %v1327_v30 = vld [vmem:[%s1292_s19 + $0x4] sm:$0x8]  ;;  %v502_v31 = vld [vmem:[%s1292_s19 + $0x8] sm:$0x1]  ;;  %v477_v41 = vunpack.c.l.bf16 %v476_v26  ;;  %v485_v44 = vunpack.c.l.bf16 %v1323_v27 }
  0x5c   : > { %v1337_v36 = vld [vmem:[%s1292_s19 + $0x8] sm:$0x4]  ;;  %v1340_v37 = vld [vmem:[%s1292_s19 + $0x8] sm:$0x8]  ;;  %s352_s26 = scalar_lea.vmem %s1563_s3, %s832_s18  ;;  %v1345_v39 = vperm.slane %v402_v18, 0  ;;  %v1347_v40 = vperm.slane %v402_v18, 1  ;;  %v493_v45 = vunpack.c.l.bf16 %v1327_v30  ;;  %v503_v48 = vunpack.c.l.bf16 %v502_v31 }
  0x5d   : > { %s618_s0 = ssub.f32 %s833_s8, %s834_s17  ;;  %v393_v42 = vperm.slane %v1303_v6, 3  ;;  %v1350_v43 = vperm.slane %v419_v25, 2  ;;  %v450_v47 = vld [vmem:[%s1292_s19] sm:$0x8]  ;;  %v519_v49 = vunpack.c.l.bf16 %v1337_v36  ;;  %v529_v50 = vunpack.c.l.bf16 %v1340_v37  ;;  %v1359_v51 = vld [vmem:[%s352_s26] sm:$0xf] }
  0x5e   : > { %v1361_v53 = vperm.slane %v419_v25, 3  ;;  %v1363_v54 = vperm.slane %v435_v34, 4  ;;  %v1365_v55 = vperm.slane %v435_v34, 5  ;;  %v1367_v56 = vperm.slane %v469_v35, 0  ;;  %v510_v1 = vld [vmem:[%s1292_s19 + $0x8] sm:$0x2] }
  0x5f   : > { %v619_v5 = vstv %s618_s0  ;;  %v1369_v57 = vperm.slane %v469_v35, 1  ;;  %v1371_v58 = vperm.slane %v477_v41, 2  ;;  %v1373_v59 = vperm.slane %v477_v41, 3  ;;  %v554_v26 = vld [vmem:[%s1292_s19 + $0xc] sm:$0x4]  ;;  %s615_s7 = sld [smem:[#allocation2]] }
  0x60   : > { %918 = vset.pattern.permute.xlu0 %v1115_v3  ;;  %920 = vset.pattern.permute.xlu1 %v1116_v4  ;;  %922 = vrcp.f32 %v619_v5  ;;  %v631_v13 = vand.u32 2147483648, %v619_v5  ;;  %vm625_vm0 = vweird.f32 %v619_v5  ;;  %v629_v15 = vand.u32 2147483647, %v619_v5  ;;  %s836_s23 = sshll.u32 %s1173_s25, 1  ;;  %s831_s27 = sshll.u32 %s1280_s15, 1 }
  0x61   : > { %370 = vperm.xlu0 %918, %v355_v0   ;;  %390 = vperm.xlu1 %920, %v355_v0   ;;  %v451_v60 = vunpack.c.l.bf16 %v450_v47  ;;  %v1375_v61 = vperm.slane %v485_v44, 4  ;;  %v1377_v62 = vperm.slane %v493_v45, 7  ;;  %v357_v63 = vunpack.c.l.bf16 %v1359_v51  ;;  %s658_s14 = scalar_lea.hbm %s1565_s5, %s836_s23  ;;  %s342_s29 = scalar_lea.vmem [#allocation9], %s831_s27 }
  0x62   : > { %v632_v33 = vor.u32 1.1754944e-38, %v631_v13  ;;  %vm630_vm3 = vcmp.eq.f32.partialorder %v629_v15, 8.507059e+37  ;;  %v394_v0 = vperm.slane %v1309_v8, 3  ;;  %v1382_v3 = vperm.slane %v503_v48, 0  ;;  %v546_v15 = vld [vmem:[%s1292_s19 + $0xc] sm:$0x2] }
  0x63   : > { %vm407_vm4 = vcmask 1041409   ;;  %v1396_v20 = vperm.slane %v451_v60, 6  ;;  %v511_v25 = vunpack.c.l.bf16 %v510_v1  ;;  %v547_v6 = vunpack.c.l.bf16 %v546_v15  ;;  %s660_s12 = sshll.u32 %s342_s29, 4  ;;  %s662_s8 = sshll.u32 %s658_s14, 4  ;;  %s661_s12 = int_to_ptr.vmem [resolvable:$true] %s660_s12  ;;  %s663_s8 = int_to_ptr.hbm [resolvable:$true] %s662_s8 }
  0x64   : > { %v555_v32 = vunpack.c.l.bf16 %v554_v26  ;;  %vm606_vm6 = vcmask 1041408   ;;  %s348_s17 = scalar_lea.vmem [#allocation10], %s1280_s15  ;;  %s1015_s18 = sshra.s32 %s663_s8, 4  ;;  %s1016_s18 = int_to_ptr.hbm [resolvable:$true] %s1015_s18 }
  0x65   : > { %v1410_v34 = vperm.slane %v511_v25, 2  ;;  %v1412_v35 = vperm.slane %v511_v25, 3  ;;  %s1508_s0 = sshll.u32 %s348_s17, 4  ;;  %s1017_s20 = scalar_lea.hbm %s1016_s18, 2  ;;  %s674_s0 = int_to_ptr.vmem [resolvable:$true] %s1508_s0 }
  0x66   : > { %v923_v7 = vpop.eup %922  ;;  %v1429_v1 = vperm.slane %v555_v32, 5  ;;  %p1018_p6 = scmp.ne.s32.totalorder %s1016_s18, %s1017_s20  ;;  %p1022_p8 = scmp.lt.s32.totalorder %s1016_s18, %s1565_s5 }
  0x67   : > { %v621_v10 = vmul.f32 %v923_v7, %v619_v5  ;;  %vm626_vm1 = vweird.f32 %v923_v7  ;;  %v1386_v5 = vperm.slane %v519_v49, 5 }
  0x68   : > { %vm1332_vm2 = vmor %vm625_vm0, %vm626_vm1  ;;  %p1019_p13 = pnand %p1018_p6, %p1204_p11 }
  0x69   : > { %921 = vset.pattern.permute.xlu0 %v1116_v4  ;;  %v622_v14 = vsub.f32 1.0, %v621_v10  ;;  %v1384_v4 = vperm.slane %v503_v48, 1 }
  0x6a   : > { %p1020_p7 = pneg %p1019_p13 }
  0x6b   : > { %v623_v28 = vmul.f32 %v923_v7, %v622_v14  ;;  %v536_v14 = vld [vmem:[%s1292_s19 + $0xc] sm:$0x1] }
  0x6c   : > { %v537_v31 = vunpack.c.l.bf16 %v536_v14 }
  0x6d   : > { %v624_v38 = vadd.f32 %v923_v7, %v623_v28 }
  0x6e   : > { %v1420_v47 = vperm.slane %v537_v31, 1 }
  0x6f   : > { %v628_v46 = vsel %vm1332_vm2, %v923_v7, %v624_v38  ;;  %v1388_v7 = vperm.slane %v529_v50, 6 }
  0x70   : > { %v633_v52 = vsel %vm630_vm3, %v632_v33, %v628_v46  ;;  %v1408_v33 = vld [vmem:[%s1292_s19 + $0x10] sm:$0x2]  ;;  %v1418_v46 = vperm.slane %v537_v31, 0 }
  0x71   : > { %841 = vpush %v633_v52  ;;  %v583_v48 = vunpack.c.l.bf16 %v1408_v33 }
  0xa2   : > { %s842_s13 = spop %841 }
  0xca   : > { %v361_v21 = vpop.permute.xlu0 %360  ;;  %v381_v22 = vpop.permute.xlu1 %380 }
  0xcb   : > { %v365_v10 = vmul.f32 %v363_v11, %v361_v21  ;;  %v366_v12 = vmul.f32 %v364_v16, %v361_v21  ;;  %v385_v18 = vmul.f32 %v383_v17, %v381_v22  ;;  %v386_v19 = vmul.f32 %v384_v23, %v381_v22  ;;  %v564_v16 = vld [vmem:[%s1292_s19 + $0xc] sm:$0x8]  ;;  %v572_v21 = vld [vmem:[%s1292_s19 + $0x10] sm:$0x1]  ;;  %s671_s19 = scalar_lea.hbm %s1566_s6, %s1173_s25  ;;  %s644_s25 = scalar_lea.sflag [#allocation4], %s1280_s15 }
  0xcc   : > { %v1405_v23 = vperm.slane %v493_v45, 6  ;;  %v565_v36 = vunpack.c.l.bf16 %v564_v16  ;;  %v573_v37 = vunpack.c.l.bf16 %v572_v21  ;;  %v1422_v45 = vperm.slane %v547_v6, 2  ;;  %s1510_s30 = sshll.u32 %s671_s19, 4  ;;  %s676_s30 = int_to_ptr.hbm [resolvable:$true] %s1510_s30 }
  0xd3   : > { %v371_v2 = vpop.permute.xlu0 %370  ;;  %v391_v9 = vpop.permute.xlu1 %390 }
  0xd4   : > { %v375_v13 = vmul.f32 %v373_v24, %v371_v2  ;;  %v376_v8 = vmul.f32 %v374_v29, %v371_v2  ;;  %v395_v11 = vmul.f32 %v393_v42, %v391_v9  ;;  %v396_v30 = vmul.f32 %v394_v0, %v391_v9 }
  0xd5   : > { %v1401_v24 = vperm.slane %v451_v60, 7  ;;  %v1403_v29 = vperm.slane %v485_v44, 5  ;;  %v1414_v42 = vperm.slane %v519_v49, 4  ;;  %v1416_v44 = vperm.slane %v529_v50, 7 }
  0xd6   : > { %v377_v27 = vadd.f32 %v375_v13, %v365_v10  ;;  %v378_v28 = vadd.f32 %v376_v8, %v366_v12  ;;  %v1425_v60 = vperm.slane %v547_v6, 3  ;;  %v1427_v0 = vperm.slane %v555_v32, 4 }
  0xd7   : > { %v1431_v49 = vperm.slane %v565_v36, 6  ;;  %v1433_v50 = vperm.slane %v565_v36, 7  ;;  %v1435_v2 = vperm.slane %v573_v37, 0 }
  0xd8   : > { %v387_v17 = vadd.f32 %v385_v18, %v377_v27  ;;  %v388_v22 = vadd.f32 %v386_v19, %v378_v28 }
  0xda   : > { %v397_v38 = vadd.f32 %v395_v11, %v387_v17  ;;  %v398_v41 = vadd.f32 %v396_v30, %v388_v22  ;;  %v1442_v11 = vperm.slane %v573_v37, 1  ;;  %v1446_v30 = vperm.slane %v583_v48, 2 }
  0xdc   : > { %v399_v51 = vsub.f32 %v397_v38, %v357_v63  ;;  %v400_v52 = vsub.f32 %v398_v41, %v357_v63 }
  0xde   : > { %v406_v9 = vrot.slane %v400_v52, 7  ;;  %v413_v10 = vrot.slane %v399_v51, 1  ;;  %v421_v12 = vrot.slane %v399_v51, 2  ;;  %v422_v13 = vrot.slane %v400_v52, 1 }
  0xdf   : > { %v428_v8 = vrot.slane %v399_v51, 3  ;;  %v429_v14 = vrot.slane %v400_v52, 2  ;;  %v437_v15 = vrot.slane %v399_v51, 4  ;;  %v438_v63 = vrot.slane %v400_v52, 3 }
  0xe0   : > { %v408_v18 = vsel %vm407_vm4, %v406_v9, %v399_v51  ;;  %v414_v19 = vsel %vm407_vm4, %v400_v52, %v413_v10  ;;  %v423_v25 = vsel %vm407_vm4, %v422_v13, %v421_v12  ;;  %v444_v26 = vrot.slane %v399_v51, 5 }
  0xe1   : > { %v410_v27 = vmul.f32 %v408_v18, %v1345_v39  ;;  %v416_v28 = vmul.f32 %v414_v19, %v1347_v40  ;;  %v430_v16 = vsel %vm407_vm4, %v429_v14, %v428_v8  ;;  %v439_v21 = vsel %vm407_vm4, %v438_v63, %v437_v15 }
  0xe2   : > { %v445_v31 = vrot.slane %v400_v52, 4  ;;  %v453_v6 = vrot.slane %v399_v51, 6  ;;  %v425_v22 = vmul.f32 %v423_v25, %v1350_v43  ;;  %v454_v32 = vrot.slane %v400_v52, 5 }
  0xe3   : > { %v417_v17 = vadd.f32 %v416_v28, %v410_v27  ;;  %v460_v36 = vrot.slane %v399_v51, 7  ;;  %v461_v40 = vrot.slane %v400_v52, 6  ;;  %v471_v37 = vmul.f32 %v1367_v56, %v414_v19 }
  0xe4   : > { %v446_v39 = vsel %vm407_vm4, %v445_v31, %v444_v26  ;;  %v474_v38 = vmul.f32 %v1369_v57, %v423_v25  ;;  %v432_v9 = vmul.f32 %v430_v16, %v1361_v53  ;;  %v441_v10 = vmul.f32 %v439_v21, %v1363_v54 }
  0xe5   : > { %v426_v41 = vadd.f32 %v425_v22, %v417_v17  ;;  %v448_v12 = vmul.f32 %v446_v39, %v1365_v55  ;;  %v455_v13 = vsel %vm407_vm4, %v454_v32, %v453_v6  ;;  %v1459_v43 = vsel %vm407_vm4, %v461_v40, %v460_v36 }
  0xe6   : > { %v475_v51 = vadd.f32 %v474_v38, %v471_v37  ;;  %v479_v8 = vmul.f32 %v1371_v58, %v430_v16  ;;  %v482_v56 = vmul.f32 %v1373_v59, %v439_v21  ;;  %v500_v57 = vmul.f32 %v1377_v62, %v423_v25 }
  0xe7   : > { %v433_v52 = vadd.f32 %v432_v9, %v426_v41  ;;  %v505_v14 = vmul.f32 %v1382_v3, %v430_v16  ;;  %v487_v54 = vmul.f32 %v1375_v61, %v446_v39  ;;  %v526_v55 = vmul.f32 %v1386_v5, %v430_v16 }
  0xe8   : > { %v480_v53 = vadd.f32 %v479_v8, %v475_v51  ;;  %v531_v15 = vmul.f32 %v1388_v7, %v439_v21  ;;  %v508_v19 = vmul.f32 %v1384_v4, %v439_v21  ;;  %v457_v58 = vmul.f32 %v455_v13, %v1396_v20 }
  0xe9   : > { %v442_v63 = vadd.f32 %v441_v10, %v433_v52  ;;  %v506_v18 = vadd.f32 %v505_v14, %v500_v57  ;;  %v464_v59 = vmul.f32 %v1459_v43, %v1401_v24  ;;  %v490_v62 = vmul.f32 %v1403_v29, %v455_v13 }
  0xea   : > { %v483_v26 = vadd.f32 %v482_v56, %v480_v53  ;;  %v495_v3 = vmul.f32 %v1405_v23, %v1459_v43  ;;  %v513_v5 = vmul.f32 %v1410_v34, %v446_v39  ;;  %v532_v7 = vadd.f32 %v531_v15, %v526_v55 }
  0xeb   : > { %v449_v61 = vadd.f32 %v448_v12, %v442_v63  ;;  %v509_v25 = vadd.f32 %v508_v19, %v506_v18  ;;  %v516_v28 = vmul.f32 %v1412_v35, %v455_v13  ;;  %v521_v4 = vmul.f32 %v1414_v42, %v1459_v43 }
  0xec   : > { %v488_v27 = vadd.f32 %v487_v54, %v483_v26  ;;  %v534_v20 = vmul.f32 %v1416_v44, %v446_v39  ;;  %v549_v29 = vmul.f32 %v1422_v45, %v439_v21  ;;  %v552_v31 = vmul.f32 %v1425_v60, %v446_v39 }
  0xed   : > { %v458_v16 = vadd.f32 %v457_v58, %v449_v61  ;;  %v514_v24 = vadd.f32 %v513_v5, %v509_v25  ;;  %v539_v17 = vmul.f32 %v1418_v46, %v455_v13  ;;  %v557_v34 = vmul.f32 %v1427_v0, %v455_v13 }
  0xee   : > { %v491_v23 = vadd.f32 %v490_v62, %v488_v27  ;;  %v535_v6 = vadd.f32 %v534_v20, %v532_v7  ;;  %v553_v35 = vadd.f32 %v552_v31, %v549_v29  ;;  %v567_v36 = vmul.f32 %v1431_v49, %v446_v39 }
  0xef   : > { %v465_v22 = vadd.f32 %v464_v59, %v458_v16  ;;  %v517_v32 = vadd.f32 %v516_v28, %v514_v24  ;;  %v542_v44 = vmul.f32 %v1420_v47, %v1459_v43  ;;  %v570_v45 = vmul.f32 %v1433_v50, %v455_v13 }
  0xf0   : > { %v496_v42 = vadd.f32 %v495_v3, %v491_v23  ;;  %v540_v40 = vadd.f32 %v539_v17, %v535_v6  ;;  %v558_v37 = vadd.f32 %v557_v34, %v553_v35  ;;  %v560_v46 = vmul.f32 %v1429_v1, %v1459_v43 }
  0xf1   : > { %v466_v21 = vmul.f32 %v465_v22, %v465_v22  ;;  %v522_v60 = vadd.f32 %v521_v4, %v517_v32  ;;  %v571_v0 = vadd.f32 %v570_v45, %v567_v36  ;;  %v575_v9 = vmul.f32 %v1435_v2, %v1459_v43 }
  0xf2   : > { %v497_v38 = vmul.f32 %v496_v42, %v496_v42  ;;  %v543_v41 = vadd.f32 %v542_v44, %v540_v40  ;;  %v580_v49 = vmul.f32 %v1442_v11, %v455_v13  ;;  %v561_v12 = vadd.f32 %v560_v46, %v558_v37 }
  0xf3   : > { %v523_v10 = vmul.f32 %v522_v60, %v522_v60  ;;  %v585_v47 = vmul.f32 %v1446_v30, %v1459_v43  ;;  %v576_v8 = vadd.f32 %v575_v9, %v571_v0  ;;  %v589_v52 = vperm.slane %v583_v48, 3 }
  0xf4   : > { %v498_v39 = vadd.f32 %v497_v38, %v466_v21  ;;  %v544_v51 = vmul.f32 %v543_v41, %v543_v41  ;;  %v562_v1 = vmul.f32 %v561_v12, %v561_v12  ;;  %v637_v3 = vstv %s842_s13 }
  0xf5   : > { %v586_v57 = vadd.f32 %v585_v47, %v580_v49  ;;  %v577_v53 = vmul.f32 %v576_v8, %v576_v8  ;;  %v590_v2 = vmul.f32 %v589_v52, %v1459_v43  ;;  %v635_v43 = vstv %s615_s7  ;;  %s1021_s7 = scalar_lea.hbm %s1565_s5, 4 }
  0xf6   : > { %v524_v50 = vadd.f32 %v523_v10, %v498_v39  ;;  %p1023_p0 = scmp.lt.s32.totalorder %s1021_s7, %s1017_s20 }
  0xf7   : > { %v587_v13 = vmul.f32 %v586_v57, %v586_v57  ;;  %v592_v55 = vmul.f32 %v590_v2, %v590_v2 }
  0xf8   : > { %v545_v56 = vadd.f32 %v544_v51, %v524_v50  ;;  %p1024_p5 = por %p1023_p0, %p1022_p8 }
  0xfa   : > { %v563_v14 = vadd.f32 %v562_v1, %v545_v56  ;;  %p1025_p9 = pnand %p1024_p5, %p1020_p7 }
  0xfc   : > { %v578_v11 = vadd.f32 %v577_v53, %v563_v14 }
  0xfe   : > { %v588_v54 = vadd.f32 %v587_v13, %v578_v11 }
 0x100   : > { %v593_v15 = vadd.f32 %v592_v55, %v588_v54 }
 0x102   : > { %924 = vrsqrt.f32 %v593_v15  ;;  %vm601_vm5 = vcmp.eq.f32.partialorder %v593_v15, inf  ;;  %v604_v26 = vand.u32 2147483648, %v593_v15  ;;  %vm603_vm7 = vcmp.eq.f32.partialorder %v593_v15, 0.0 }
 0x108   : > { %v925_v30 = vpop.eup %924 }
 0x109   : > { %v595_v63 = vmul.f32 %v925_v30, %v593_v15 }
 0x10b   : > { %v596_v18 = vmul.f32 %v925_v30, %v595_v63 }
 0x10d   : > { %v597_v33 = vmul.f32 0.5, %v596_v18 }
 0x10f   : > { %v598_v48 = vsub.f32 1.5, %v597_v33 }
 0x111   : > { %v599_v19 = vmul.f32 %v925_v30, %v598_v48 }
 0x113   : > { %v600_v58 = vmul.f32 %v599_v19, %v593_v15 }
 0x115   : > { %v602_v59 = vsel %vm601_vm5, %v593_v15, %v600_v58 }
 0x116   : > { %v605_v62 = vsel %vm603_vm7, %v604_v26, %v602_v59 }
 0x117   : > { %v607_v61 = vsel %vm606_vm6, %v605_v62, -inf  ;;  %v636_v25 = vsub.f32 %v605_v62, %v635_v43 }
 0x118   : > { %v608_v5 = vrot.slane %v607_v61, 4 }
 0x119   : > { %v638_v7 = vmul.f32 %v637_v3, %v636_v25 }
 0x11a   : > { %v609_v27 = vmax.f32 %v607_v61, %v608_v5 }
 0x11b   : > { %v639_v28 = vadd.f32 0.5, %v638_v7 }
 0x11c   : > { %v610_v4 = vrot.slane %v609_v27, 2 }
 0x11d   : > { %v640_v20 = vmax.f32 %v639_v28, 0.0 }
 0x11e   : > { %v611_v16 = vmax.f32 %v609_v27, %v610_v4 }
 0x11f   : > { %v641_v24 = vmin.f32 %v640_v20, 1.0 }
 0x120   : > { %v612_v29 = vrot.slane %v611_v16, 1 }
 0x121   : > { %642 = vst [vmem:[%s342_s29] sm:$0x3] %v641_v24 }
 0x122   : > { %1028 = shalt.err (!%p1025_p9)
}
 0x123   : > { %851 = dma.vmem_to_hbm [thread:$0]  (%p1204_p11), %s661_s12, 32, %s663_s8, %s644_s25   ;;  %v613_v31 = vmax.f32 %v611_v16, %v612_v29 }
 0x124   : > { %s649_s27 = scalar_lea.sflag [#allocation11], %s1280_s15  ;;  %s1043_s1 = sshra.s32 %s676_s30, 4  ;;  %s1044_s1 = int_to_ptr.hbm [resolvable:$true] %s1043_s1 }
 0x125   : > { %614 = vst [vmem:[%s348_s17] sm:$0x1] %v613_v31  ;;  %s1045_s10 = scalar_lea.hbm %s1044_s1, 1  ;;  %s1049_s16 = scalar_lea.hbm %s1566_s6, 2 }
 0x126   : > { %p1046_p10 = scmp.ne.s32.totalorder %s1044_s1, %s1045_s10  ;;  %p1050_p3 = scmp.lt.s32.totalorder %s1044_s1, %s1566_s6 }
 0x127   : > { %p1051_p4 = scmp.lt.s32.totalorder %s1049_s16, %s1045_s10 }
 0x128   : > { %p1047_p1 = pnand %p1046_p10, %p1204_p11 }
 0x129   : > { %p1052_p6 = por %p1051_p4, %p1050_p3 }
 0x12a   : > { %p1048_p2 = pneg %p1047_p1 }
 0x12c   : > { %p1053_p13 = pnand %p1052_p6, %p1048_p2 }
 0x12e   : > { %1056 = shalt.err (!%p1053_p13)
}
 0x12f   : > { %852 = dma.vmem_to_hbm [thread:$0]  (%p1204_p11), %s674_s0, 16, %s676_s30, %s649_s27  }
 0x130 PF: > { %s687_s12 = sand.u32 1, %s1095_s21   ;;  %p1590_p7 = scmp.ge.s32.totalorder %s1107_s24, 2 }
 0x131   : > { %s688_s8 = scalar_lea.sflag [#allocation4], %s687_s12 }
 0x132   : > { %p867_p8 = pnand %p1590_p7, %p1208_p12 }
 0x134   : > { %p868_p0 = pneg %p867_p8 }
 0x136   : > { %1086 = dma.done.wait (%p868_p0), %s688_s8, 32  }
 0x137   : > { %1088 = vsyncadd (%p868_p0), %s688_s8, 4294967264  ;;  %s698_s17 = scalar_lea.sflag [#allocation11], %s687_s12 }
 0x138   : > { %1090 = dma.done.wait (%p868_p0), %s698_s17, 16  }
 0x139   : > { %1092 = vsyncadd (%p868_p0), %s698_s17, 4294967280  ;;  %s1591_s24 = sld [smem:[#allocation18_spill]]  ;;  %s1594_s21 = smov %s1099_s22 }
 0x13a   : > { %s1592_s9 = sld [smem:[#allocation17_spill]] }
 0x13b   : > { %s1593_s23 = sld [smem:[#allocation19_spill]] }
 0x13f   : > { %p27_p11 = scmp.ge.s32.totalorder %s1591_s24, 4  }
 0x140   : > { %s1595_s22 = smov %s1592_s9 }
 0x141   :  { %29 = sbr.rel (!%p27_p11) target bundleno = 13 (0xd), region = 123 }
 0x146   :  { %703 = vsyncpa [#allocation3], 1 }
 0x147   :  { %705 = vsyncpa [#allocation3 + $0x1], 1 }
 0x148   :  { %706 = vsyncpa [#allocation8], 1 }
 0x149   :  { %708 = vsyncpa [#allocation8 + $0x1], 1 }
 0x14a   :  { %709 = vsyncpa [#allocation4], 1 }
 0x14b   :  { %711 = vsyncpa [#allocation4 + $0x1], 1 }
 0x14c   :  { %712 = vsyncpa [#allocation11], 1 }
 0x14d   :  { %714 = vsyncpa [#allocation11 + $0x1], 1 }
 0x14e   :  { %715 = vsyncpa [#allocation5], 1 }
 0x14f   :  { %717 = vsyncpa [#allocation5 + $0x1], 1 }

</bundles_post_ra>
